<compile_context>
chip_gen: v6e
topology: v6e:2x2x1
jax: 0.10.0
libtpu: 0.0.40
codegen_flags: <defaults>
</compile_context>

<pallas_src>
import functools

import jax
import jax.numpy as jnp
from jax.experimental import pallas as pl
from jax.experimental.pallas import tpu as pltpu

_SQRT_2_OVER_PI = 0.7978845608028654


def _gelu_tanh(v):
    # tanh-approximation of GELU (dtype-generic: runs in bf16 on v6e/v7x).
    # TODO(synk): PyTorch F.gelu defaults to the exact erf form; the tanh
    # approximation (diff < ~1e-3) is used for portable Mosaic lowering.
    return 0.5 * v * (1.0 + jnp.tanh(_SQRT_2_OVER_PI * (v + 0.044715 * (v * v * v))))


def _round_up(n, m):
    return (n + m - 1) // m * m


def _default_act_dtype():
    """bf16 elementwise on v6e/v7x (bf16 VPU/EUP), f32 elsewhere (v5e etc.)."""
    try:
        kind = jax.devices()[0].device_kind.lower()
    except Exception:  # pragma: no cover - be conservative
        return jnp.float32
    if "v6" in kind or "v7" in kind:
        return jnp.bfloat16
    return jnp.float32


def _pinn_cnn_kernel(x_ref,
                     wio_ref, bio_ref,
                     w0_ref, b0_ref, w1_ref, b1_ref,
                     w2_ref, b2_ref, w3_ref, b3_ref,
                     wfc1_ref, bfc1_ref, wfc2_ref, bfc2_ref,
                     o_ref, *, act_dtype):
    """Feature-major fused MLP: activations are [features, tile_b]."""

    def mm_bf16(w_ref, a):
        # bf16 operands at the MXU boundary, f32 accumulation.
        return jnp.dot(w_ref[...], a.astype(jnp.bfloat16),
                       preferred_element_type=jnp.float32)

    # Folded fc0·fc01 (no activation between them), kept fully in f32:
    # tiny K=8 matmul, slightly better first-layer accuracy for free.
    h = jnp.dot(wio_ref[...], x_ref[...],
                preferred_element_type=jnp.float32) + bio_ref[...]

    # Four 1x1-conv layers + GELU; elementwise chain in act_dtype
    # (bf16 on v6e/v7x halves vreg pressure and doubles VPU/EUP throughput).
    for w_ref, b_ref in ((w0_ref, b0_ref), (w1_ref, b1_ref),
                         (w2_ref, b2_ref), (w3_ref, b3_ref)):
        h = _gelu_tanh((mm_bf16(w_ref, h) + b_ref[...]).astype(act_dtype))

    # fc1 + tanh in f32 elementwise; fc2 fully in f32 (tiny, accuracy).
    h = jnp.tanh(mm_bf16(wfc1_ref, h) + bfc1_ref[...])
    o_ref[...] = (jnp.dot(wfc2_ref[...], h, preferred_element_type=jnp.float32)
                  + bfc2_ref[...]).astype(o_ref.dtype)


def pinn_cnn_forward(x, params, *, tile_b=1024, act_dtype=None):
    """x: [H, W, N_input] float32. Returns [1, H, W, N_output] (PyTorch layout).

    Parameters are stored in PyTorch-native layout: weights [out, in]
    (Conv2d 1x1 kernels squeezed to [out, in]), biases [out].
    """
    (wfc0, bfc0, wfc01, bfc01, w0, b0, w1, b1, w2, b2, w3, b3,
     wfc1, bfc1, wfc2, bfc2) = params
    width, n_in = wfc0.shape
    n_out = wfc2.shape[0]
    H, Wsp, _ = x.shape
    n_pts = H * Wsp

    if act_dtype is None:
        act_dtype = _default_act_dtype()

    # ----- tiling: feature-major [features, points], points on the lane axis -----
    n_in_pad = _round_up(n_in, 8)          # sublane-aligned input features
    n_out_pad = _round_up(n_out, 8)        # <=8 sublanes of output pad
    # lane tile (multiple of 128); clamp so the grid has >=2 steps when possible
    # so v7x can shard across both TensorCores.
    tile_b = max(128, min(_round_up(tile_b, 128),
                          _round_up(pl.cdiv(n_pts, 2), 128)))
    n_pts_pad = _round_up(n_pts, tile_b)

    # Wrapper-side layout plumbing: transpose to feature-major; only the tiny
    # [<=8, n_pts] slab gets padded (no full-batch pad copy).
    xf = x.reshape(n_pts, n_in).astype(jnp.float32).T          # [n_in, n_pts]
    xf = jnp.pad(xf, ((0, n_in_pad - n_in), (0, n_pts_pad - n_pts)))

    # ----- fold fc0 @ fc01 in f32 (no activation between them) -----
    w_io = (wfc01 @ wfc0).astype(jnp.float32)                  # [width, n_in]
    b_io = (wfc01 @ bfc0 + bfc01).astype(jnp.float32)          # [width]
    w_io = jnp.pad(w_io, ((0, 0), (0, n_in_pad - n_in)))       # zero-pad K dim

    # fc2 padded to n_out_pad sublanes; stays f32 (tiny, accuracy).
    wfc2_p = jnp.pad(wfc2.astype(jnp.float32), ((0, n_out_pad - n_out), (0, 0)))
    bfc2_p = jnp.pad(bfc2.astype(jnp.float32), (0, n_out_pad - n_out))

    weights = [w_io,                                            # f32 first layer
               w0.astype(jnp.bfloat16), w1.astype(jnp.bfloat16),
               w2.astype(jnp.bfloat16), w3.astype(jnp.bfloat16),
               wfc1.astype(jnp.bfloat16),
               wfc2_p]                                          # f32 last layer
    biases = [b.reshape(-1, 1).astype(jnp.float32)
              for b in (b_io, b0, b1, b2, b3, bfc1, bfc2_p)]    # [out, 1] columns

    inputs = [xf]
    in_specs = [pl.BlockSpec((n_in_pad, tile_b), lambda i: (0, i))]
    for w, b in zip(weights, biases):
        inputs += [w, b]
        # Constant index maps -> parameters stay VMEM-resident across steps.
        in_specs += [pl.BlockSpec(w.shape, lambda i: (0, 0)),
                     pl.BlockSpec(b.shape, lambda i: (0, 0))]

    grid = (n_pts_pad // tile_b,)

    # ----- scheduler hints / VMEM budget -----
    param_bytes = sum(int(a.size) * a.dtype.itemsize for a in inputs[1:])
    flops = 2 * n_pts_pad * (width * n_in_pad + 4 * width * width
                             + 128 * width + n_out_pad * 128)
    transcendentals = n_pts_pad * (4 * width + 128)
    bytes_accessed = int(xf.size) * 4 + n_pts_pad * n_out_pad * 4 + param_bytes

    act_itemsize = jnp.dtype(act_dtype).itemsize
    io_tile_bytes = 2 * tile_b * (n_in_pad + n_out_pad) * 4     # double-buffered x/out
    act_bytes = 2 * tile_b * (128 * 4 + 6 * width * act_itemsize)  # live intermediates
    vmem_limit = int(min(64 << 20,                               # v7x VMEM ceiling
                         max(16 << 20,
                             io_tile_bytes + 2 * param_bytes + act_bytes + (4 << 20))))

    out_padded = pl.pallas_call(
        functools.partial(_pinn_cnn_kernel, act_dtype=act_dtype),
        out_shape=jax.ShapeDtypeStruct((n_out_pad, n_pts_pad), jnp.float32),
        grid=grid,
        in_specs=in_specs,
        out_specs=pl.BlockSpec((n_out_pad, tile_b), lambda i: (0, i)),
        compiler_params=pltpu.CompilerParams(
            dimension_semantics=("parallel",),   # v7x: shard steps across both TCs
            vmem_limit_bytes=vmem_limit),
        cost_estimate=pl.CostEstimate(
            flops=int(flops),
            transcendentals=int(transcendentals),
            bytes_accessed=int(bytes_accessed)),
    )(*inputs)

    out = out_padded[:n_out, :n_pts].T.reshape(H, Wsp, n_out)
    return out[None]   # [1, H, W, N_output], matching the PyTorch module


def init_params(key, n_input, n_output, width):
    """Deterministic parameters in PyTorch-native layout: W [out, in], b [out]."""
    dims = [(width, n_input), (width, width),                                # fc0, fc01
            (width, width), (width, width), (width, width), (width, width),  # w0..w3 (1x1)
            (128, width), (n_output, 128)]                                   # fc1, fc2
    keys = jax.random.split(key, 2 * len(dims))
    params = []
    for idx, (fan_out, fan_in) in enumerate(dims):
        k = 1.0 / (fan_in ** 0.5)
        w = jax.random.uniform(keys[2 * idx], (fan_out, fan_in), jnp.float32, -k, k)
        b = jax.random.uniform(keys[2 * idx + 1], (fan_out,), jnp.float32, -k, k)
        params += [w, b]
    return tuple(params)


def pinn_cnn_reference(x, params):
    """Pure-JAX f32 reference of the PyTorch forward pass."""
    (wfc0, bfc0, wfc01, bfc01, w0, b0, w1, b1, w2, b2, w3, b3,
     wfc1, bfc1, wfc2, bfc2) = params
    h = x @ wfc0.T + bfc0
    h = h @ wfc01.T + bfc01
    for w, b in ((w0, b0), (w1, b1), (w2, b2), (w3, b3)):
        h = _gelu_tanh(h @ w.T + b)
    h = jnp.tanh(h @ wfc1.T + bfc1)
    h = h @ wfc2.T + bfc2
    return h[None]   # [1, H, W, N_output]


if __name__ == "__main__":
    # Small shapes consistent with the module: PINN_CNN(N_input=3, N_output=1,
    # width=32), input x of shape [H, W, N_input] (two spatial dims + features).
    H, WSP, N_INPUT, N_OUTPUT, WIDTH = 16, 16, 3, 1, 32

    key = jax.random.PRNGKey(0)
    kx, kp = jax.random.split(key)
    x = jax.random.normal(kx, (H, WSP, N_INPUT), jnp.float32)
    params = init_params(kp, N_INPUT, N_OUTPUT, WIDTH)

    out = pinn_cnn_forward(x, params)
    out = jax.block_until_ready(out)

    ref = pinn_cnn_reference(x, params)
    assert out.shape == (1, H, WSP, N_OUTPUT), out.shape
    # bf16 at the MXU (and bf16 GELU chain on v6e/v7x) vs f32 reference ->
    # loose tolerance.
    max_err = float(jnp.max(jnp.abs(out - ref)))
    assert jnp.allclose(out, ref, atol=3e-2, rtol=3e-2), max_err

    print("KERNEL_OK")
</pallas_src>

<mosaic_0001>
module attributes {stable_mosaic.version = 11 : i64} {
  func.func @_pinn_cnn_kernel(%arg0: i32, %arg1: memref<8x128xf32, #tpu.memory_space<vmem>>, %arg2: memref<32x8xf32, #tpu.memory_space<vmem>>, %arg3: memref<32x1xf32, #tpu.memory_space<vmem>>, %arg4: memref<32x32xbf16, #tpu.memory_space<vmem>>, %arg5: memref<32x1xf32, #tpu.memory_space<vmem>>, %arg6: memref<32x32xbf16, #tpu.memory_space<vmem>>, %arg7: memref<32x1xf32, #tpu.memory_space<vmem>>, %arg8: memref<32x32xbf16, #tpu.memory_space<vmem>>, %arg9: memref<32x1xf32, #tpu.memory_space<vmem>>, %arg10: memref<32x32xbf16, #tpu.memory_space<vmem>>, %arg11: memref<32x1xf32, #tpu.memory_space<vmem>>, %arg12: memref<128x32xbf16, #tpu.memory_space<vmem>>, %arg13: memref<128x1xf32, #tpu.memory_space<vmem>>, %arg14: memref<8x128xf32, #tpu.memory_space<vmem>>, %arg15: memref<8x1xf32, #tpu.memory_space<vmem>>, %arg16: memref<8x128xf32, #tpu.memory_space<vmem>>) attributes {dimension_semantics = [#tpu.dimension_semantics<parallel>], iteration_bounds = array<i64: 2>, scalar_prefetch = 0 : i64, scratch_operands = 0 : i64, tpu.core_type = #tpu.core_type<tc>, window_params = [{transform_indices = @transform_0, window_bounds = array<i64: 8, 128>}, {pipeline_mode = #tpu.pipeline_mode<synchronous>, transform_indices = @transform_1, window_bounds = array<i64: 32, 8>}, {pipeline_mode = #tpu.pipeline_mode<synchronous>, transform_indices = @transform_2, window_bounds = array<i64: 32, 1>}, {pipeline_mode = #tpu.pipeline_mode<synchronous>, transform_indices = @transform_3, window_bounds = array<i64: 32, 32>}, {pipeline_mode = #tpu.pipeline_mode<synchronous>, transform_indices = @transform_4, window_bounds = array<i64: 32, 1>}, {pipeline_mode = #tpu.pipeline_mode<synchronous>, transform_indices = @transform_5, window_bounds = array<i64: 32, 32>}, {pipeline_mode = #tpu.pipeline_mode<synchronous>, transform_indices = @transform_6, window_bounds = array<i64: 32, 1>}, {pipeline_mode = #tpu.pipeline_mode<synchronous>, transform_indices = @transform_7, window_bounds = array<i64: 32, 32>}, {pipeline_mode = #tpu.pipeline_mode<synchronous>, transform_indices = @transform_8, window_bounds = array<i64: 32, 1>}, {pipeline_mode = #tpu.pipeline_mode<synchronous>, transform_indices = @transform_9, window_bounds = array<i64: 32, 32>}, {pipeline_mode = #tpu.pipeline_mode<synchronous>, transform_indices = @transform_10, window_bounds = array<i64: 32, 1>}, {pipeline_mode = #tpu.pipeline_mode<synchronous>, transform_indices = @transform_11, window_bounds = array<i64: 128, 32>}, {pipeline_mode = #tpu.pipeline_mode<synchronous>, transform_indices = @transform_12, window_bounds = array<i64: 128, 1>}, {pipeline_mode = #tpu.pipeline_mode<synchronous>, transform_indices = @transform_13, window_bounds = array<i64: 8, 128>}, {pipeline_mode = #tpu.pipeline_mode<synchronous>, transform_indices = @transform_14, window_bounds = array<i64: 8, 1>}, {transform_indices = @transform_15, window_bounds = array<i64: 8, 128>}]} {
    %c0 = arith.constant 0 : index
    %c0_0 = arith.constant 0 : index
    %0 = vector.load %arg2[%c0, %c0_0] : memref<32x8xf32, #tpu.memory_space<vmem>>, vector<32x8xf32>
    %c0_1 = arith.constant 0 : index
    %c0_2 = arith.constant 0 : index
    %1 = vector.load %arg1[%c0_1, %c0_2] : memref<8x128xf32, #tpu.memory_space<vmem>>, vector<8x128xf32>
    %cst = arith.constant dense<0.000000e+00> : vector<32x128xf32>
    %2 = tpu.matmul %0, %1, %cst {dimension_numbers = #tpu.dot_dimension_numbers<[1], [0], [0], [1], [0, 0, 1, 1], [], []>} : vector<32x8xf32>, vector<8x128xf32>, vector<32x128xf32> -> vector<32x128xf32>
    %c0_3 = arith.constant 0 : index
    %c0_4 = arith.constant 0 : index
    %3 = vector.load %arg3[%c0_3, %c0_4] : memref<32x1xf32, #tpu.memory_space<vmem>>, vector<32x1xf32>
    %4 = vector.broadcast %3 : vector<32x1xf32> to vector<32x128xf32>
    %5 = arith.addf %2, %4 : vector<32x128xf32>
    %c0_5 = arith.constant 0 : index
    %c0_6 = arith.constant 0 : index
    %6 = vector.load %arg4[%c0_5, %c0_6] : memref<32x32xbf16, #tpu.memory_space<vmem>>, vector<32x32xbf16>
    %7 = arith.truncf %5 : vector<32x128xf32> to vector<32x128xbf16>
    %cst_7 = arith.constant dense<0.000000e+00> : vector<32x128xf32>
    %8 = tpu.matmul %6, %7, %cst_7 {dimension_numbers = #tpu.dot_dimension_numbers<[1], [0], [0], [1], [0, 0, 1, 1], [], []>} : vector<32x32xbf16>, vector<32x128xbf16>, vector<32x128xf32> -> vector<32x128xf32>
    %c0_8 = arith.constant 0 : index
    %c0_9 = arith.constant 0 : index
    %9 = vector.load %arg5[%c0_8, %c0_9] : memref<32x1xf32, #tpu.memory_space<vmem>>, vector<32x1xf32>
    %10 = vector.broadcast %9 : vector<32x1xf32> to vector<32x128xf32>
    %11 = arith.addf %8, %10 : vector<32x128xf32>
    %cst_10 = arith.constant 5.000000e-01 : f32
    %12 = vector.broadcast %cst_10 : f32 to vector<32x128xf32>
    %13 = arith.mulf %12, %11 : vector<32x128xf32>
    %14 = arith.mulf %11, %11 : vector<32x128xf32>
    %15 = arith.mulf %14, %11 : vector<32x128xf32>
    %cst_11 = arith.constant 4.471500e-02 : f32
    %16 = vector.broadcast %cst_11 : f32 to vector<32x128xf32>
    %17 = arith.mulf %16, %15 : vector<32x128xf32>
    %18 = arith.addf %11, %17 : vector<32x128xf32>
    %cst_12 = arith.constant 0.797884583 : f32
    %19 = vector.broadcast %cst_12 : f32 to vector<32x128xf32>
    %20 = arith.mulf %19, %18 : vector<32x128xf32>
    %21 = math.tanh %20 : vector<32x128xf32>
    %cst_13 = arith.constant 1.000000e+00 : f32
    %22 = vector.broadcast %cst_13 : f32 to vector<32x128xf32>
    %23 = arith.addf %22, %21 : vector<32x128xf32>
    %24 = arith.mulf %13, %23 : vector<32x128xf32>
    %c0_14 = arith.constant 0 : index
    %c0_15 = arith.constant 0 : index
    %25 = vector.load %arg6[%c0_14, %c0_15] : memref<32x32xbf16, #tpu.memory_space<vmem>>, vector<32x32xbf16>
    %26 = arith.truncf %24 : vector<32x128xf32> to vector<32x128xbf16>
    %cst_16 = arith.constant dense<0.000000e+00> : vector<32x128xf32>
    %27 = tpu.matmul %25, %26, %cst_16 {dimension_numbers = #tpu.dot_dimension_numbers<[1], [0], [0], [1], [0, 0, 1, 1], [], []>} : vector<32x32xbf16>, vector<32x128xbf16>, vector<32x128xf32> -> vector<32x128xf32>
    %c0_17 = arith.constant 0 : index
    %c0_18 = arith.constant 0 : index
    %28 = vector.load %arg7[%c0_17, %c0_18] : memref<32x1xf32, #tpu.memory_space<vmem>>, vector<32x1xf32>
    %29 = vector.broadcast %28 : vector<32x1xf32> to vector<32x128xf32>
    %30 = arith.addf %27, %29 : vector<32x128xf32>
    %cst_19 = arith.constant 5.000000e-01 : f32
    %31 = vector.broadcast %cst_19 : f32 to vector<32x128xf32>
    %32 = arith.mulf %31, %30 : vector<32x128xf32>
    %33 = arith.mulf %30, %30 : vector<32x128xf32>
    %34 = arith.mulf %33, %30 : vector<32x128xf32>
    %cst_20 = arith.constant 4.471500e-02 : f32
    %35 = vector.broadcast %cst_20 : f32 to vector<32x128xf32>
    %36 = arith.mulf %35, %34 : vector<32x128xf32>
    %37 = arith.addf %30, %36 : vector<32x128xf32>
    %cst_21 = arith.constant 0.797884583 : f32
    %38 = vector.broadcast %cst_21 : f32 to vector<32x128xf32>
    %39 = arith.mulf %38, %37 : vector<32x128xf32>
    %40 = math.tanh %39 : vector<32x128xf32>
    %cst_22 = arith.constant 1.000000e+00 : f32
    %41 = vector.broadcast %cst_22 : f32 to vector<32x128xf32>
    %42 = arith.addf %41, %40 : vector<32x128xf32>
    %43 = arith.mulf %32, %42 : vector<32x128xf32>
    %c0_23 = arith.constant 0 : index
    %c0_24 = arith.constant 0 : index
    %44 = vector.load %arg8[%c0_23, %c0_24] : memref<32x32xbf16, #tpu.memory_space<vmem>>, vector<32x32xbf16>
    %45 = arith.truncf %43 : vector<32x128xf32> to vector<32x128xbf16>
    %cst_25 = arith.constant dense<0.000000e+00> : vector<32x128xf32>
    %46 = tpu.matmul %44, %45, %cst_25 {dimension_numbers = #tpu.dot_dimension_numbers<[1], [0], [0], [1], [0, 0, 1, 1], [], []>} : vector<32x32xbf16>, vector<32x128xbf16>, vector<32x128xf32> -> vector<32x128xf32>
    %c0_26 = arith.constant 0 : index
    %c0_27 = arith.constant 0 : index
    %47 = vector.load %arg9[%c0_26, %c0_27] : memref<32x1xf32, #tpu.memory_space<vmem>>, vector<32x1xf32>
    %48 = vector.broadcast %47 : vector<32x1xf32> to vector<32x128xf32>
    %49 = arith.addf %46, %48 : vector<32x128xf32>
    %cst_28 = arith.constant 5.000000e-01 : f32
    %50 = vector.broadcast %cst_28 : f32 to vector<32x128xf32>
    %51 = arith.mulf %50, %49 : vector<32x128xf32>
    %52 = arith.mulf %49, %49 : vector<32x128xf32>
    %53 = arith.mulf %52, %49 : vector<32x128xf32>
    %cst_29 = arith.constant 4.471500e-02 : f32
    %54 = vector.broadcast %cst_29 : f32 to vector<32x128xf32>
    %55 = arith.mulf %54, %53 : vector<32x128xf32>
    %56 = arith.addf %49, %55 : vector<32x128xf32>
    %cst_30 = arith.constant 0.797884583 : f32
    %57 = vector.broadcast %cst_30 : f32 to vector<32x128xf32>
    %58 = arith.mulf %57, %56 : vector<32x128xf32>
    %59 = math.tanh %58 : vector<32x128xf32>
    %cst_31 = arith.constant 1.000000e+00 : f32
    %60 = vector.broadcast %cst_31 : f32 to vector<32x128xf32>
    %61 = arith.addf %60, %59 : vector<32x128xf32>
    %62 = arith.mulf %51, %61 : vector<32x128xf32>
    %c0_32 = arith.constant 0 : index
    %c0_33 = arith.constant 0 : index
    %63 = vector.load %arg10[%c0_32, %c0_33] : memref<32x32xbf16, #tpu.memory_space<vmem>>, vector<32x32xbf16>
    %64 = arith.truncf %62 : vector<32x128xf32> to vector<32x128xbf16>
    %cst_34 = arith.constant dense<0.000000e+00> : vector<32x128xf32>
    %65 = tpu.matmul %63, %64, %cst_34 {dimension_numbers = #tpu.dot_dimension_numbers<[1], [0], [0], [1], [0, 0, 1, 1], [], []>} : vector<32x32xbf16>, vector<32x128xbf16>, vector<32x128xf32> -> vector<32x128xf32>
    %c0_35 = arith.constant 0 : index
    %c0_36 = arith.constant 0 : index
    %66 = vector.load %arg11[%c0_35, %c0_36] : memref<32x1xf32, #tpu.memory_space<vmem>>, vector<32x1xf32>
    %67 = vector.broadcast %66 : vector<32x1xf32> to vector<32x128xf32>
    %68 = arith.addf %65, %67 : vector<32x128xf32>
    %cst_37 = arith.constant 5.000000e-01 : f32
    %69 = vector.broadcast %cst_37 : f32 to vector<32x128xf32>
    %70 = arith.mulf %69, %68 : vector<32x128xf32>
    %71 = arith.mulf %68, %68 : vector<32x128xf32>
    %72 = arith.mulf %71, %68 : vector<32x128xf32>
    %cst_38 = arith.constant 4.471500e-02 : f32
    %73 = vector.broadcast %cst_38 : f32 to vector<32x128xf32>
    %74 = arith.mulf %73, %72 : vector<32x128xf32>
    %75 = arith.addf %68, %74 : vector<32x128xf32>
    %cst_39 = arith.constant 0.797884583 : f32
    %76 = vector.broadcast %cst_39 : f32 to vector<32x128xf32>
    %77 = arith.mulf %76, %75 : vector<32x128xf32>
    %78 = math.tanh %77 : vector<32x128xf32>
    %cst_40 = arith.constant 1.000000e+00 : f32
    %79 = vector.broadcast %cst_40 : f32 to vector<32x128xf32>
    %80 = arith.addf %79, %78 : vector<32x128xf32>
    %81 = arith.mulf %70, %80 : vector<32x128xf32>
    %c0_41 = arith.constant 0 : index
    %c0_42 = arith.constant 0 : index
    %82 = vector.load %arg12[%c0_41, %c0_42] : memref<128x32xbf16, #tpu.memory_space<vmem>>, vector<128x32xbf16>
    %83 = arith.truncf %81 : vector<32x128xf32> to vector<32x128xbf16>
    %cst_43 = arith.constant dense<0.000000e+00> : vector<128x128xf32>
    %84 = tpu.matmul %82, %83, %cst_43 {dimension_numbers = #tpu.dot_dimension_numbers<[1], [0], [0], [1], [0, 0, 1, 1], [], []>} : vector<128x32xbf16>, vector<32x128xbf16>, vector<128x128xf32> -> vector<128x128xf32>
    %c0_44 = arith.constant 0 : index
    %c0_45 = arith.constant 0 : index
    %85 = vector.load %arg13[%c0_44, %c0_45] : memref<128x1xf32, #tpu.memory_space<vmem>>, vector<128x1xf32>
    %86 = vector.broadcast %85 : vector<128x1xf32> to vector<128x128xf32>
    %87 = arith.addf %84, %86 : vector<128x128xf32>
    %88 = math.tanh %87 : vector<128x128xf32>
    %c0_46 = arith.constant 0 : index
    %c0_47 = arith.constant 0 : index
    %89 = vector.load %arg14[%c0_46, %c0_47] : memref<8x128xf32, #tpu.memory_space<vmem>>, vector<8x128xf32>
    %cst_48 = arith.constant dense<0.000000e+00> : vector<8x128xf32>
    %90 = tpu.matmul %89, %88, %cst_48 {dimension_numbers = #tpu.dot_dimension_numbers<[1], [0], [0], [1], [0, 0, 1, 1], [], []>} : vector<8x128xf32>, vector<128x128xf32>, vector<8x128xf32> -> vector<8x128xf32>
    %c0_49 = arith.constant 0 : index
    %c0_50 = arith.constant 0 : index
    %91 = vector.load %arg15[%c0_49, %c0_50] : memref<8x1xf32, #tpu.memory_space<vmem>>, vector<8x1xf32>
    %92 = vector.broadcast %91 : vector<8x1xf32> to vector<8x128xf32>
    %93 = arith.addf %90, %92 : vector<8x128xf32>
    %c0_51 = arith.constant 0 : index
    %c0_52 = arith.constant 0 : index
    %94 = vector.load %arg16[%c0_51, %c0_52] : memref<8x128xf32, #tpu.memory_space<vmem>>, vector<8x128xf32>
    tpu.vector_store %arg16[%c0_51, %c0_52], %93 {strides = array<i32>} : memref<8x128xf32, #tpu.memory_space<vmem>>, vector<8x128xf32>,
    return
  }
  func.func @transform_0(%arg0: i32) -> (i32, i32) {
    %c0_i32 = arith.constant 0 : i32
    %c0_i32_0 = arith.constant 0 : i32
    return %c0_i32, %arg0 : i32, i32
  }
  func.func @transform_1(%arg0: i32) -> (i32, i32) {
    %c0_i32 = arith.constant 0 : i32
    %c0_i32_0 = arith.constant 0 : i32
    %c0_i32_1 = arith.constant 0 : i32
    return %c0_i32, %c0_i32_0 : i32, i32
  }
  func.func @transform_2(%arg0: i32) -> (i32, i32) {
    %c0_i32 = arith.constant 0 : i32
    %c0_i32_0 = arith.constant 0 : i32
    %c0_i32_1 = arith.constant 0 : i32
    return %c0_i32, %c0_i32_0 : i32, i32
  }
  func.func @transform_3(%arg0: i32) -> (i32, i32) {
    %c0_i32 = arith.constant 0 : i32
    %c0_i32_0 = arith.constant 0 : i32
    %c0_i32_1 = arith.constant 0 : i32
    return %c0_i32, %c0_i32_0 : i32, i32
  }
  func.func @transform_4(%arg0: i32) -> (i32, i32) {
    %c0_i32 = arith.constant 0 : i32
    %c0_i32_0 = arith.constant 0 : i32
    %c0_i32_1 = arith.constant 0 : i32
    return %c0_i32, %c0_i32_0 : i32, i32
  }
  func.func @transform_5(%arg0: i32) -> (i32, i32) {
    %c0_i32 = arith.constant 0 : i32
    %c0_i32_0 = arith.constant 0 : i32
    %c0_i32_1 = arith.constant 0 : i32
    return %c0_i32, %c0_i32_0 : i32, i32
  }
  func.func @transform_6(%arg0: i32) -> (i32, i32) {
    %c0_i32 = arith.constant 0 : i32
    %c0_i32_0 = arith.constant 0 : i32
    %c0_i32_1 = arith.constant 0 : i32
    return %c0_i32, %c0_i32_0 : i32, i32
  }
  func.func @transform_7(%arg0: i32) -> (i32, i32) {
    %c0_i32 = arith.constant 0 : i32
    %c0_i32_0 = arith.constant 0 : i32
    %c0_i32_1 = arith.constant 0 : i32
    return %c0_i32, %c0_i32_0 : i32, i32
  }
  func.func @transform_8(%arg0: i32) -> (i32, i32) {
    %c0_i32 = arith.constant 0 : i32
    %c0_i32_0 = arith.constant 0 : i32
    %c0_i32_1 = arith.constant 0 : i32
    return %c0_i32, %c0_i32_0 : i32, i32
  }
  func.func @transform_9(%arg0: i32) -> (i32, i32) {
    %c0_i32 = arith.constant 0 : i32
    %c0_i32_0 = arith.constant 0 : i32
    %c0_i32_1 = arith.constant 0 : i32
    return %c0_i32, %c0_i32_0 : i32, i32
  }
  func.func @transform_10(%arg0: i32) -> (i32, i32) {
    %c0_i32 = arith.constant 0 : i32
    %c0_i32_0 = arith.constant 0 : i32
    %c0_i32_1 = arith.constant 0 : i32
    return %c0_i32, %c0_i32_0 : i32, i32
  }
  func.func @transform_11(%arg0: i32) -> (i32, i32) {
    %c0_i32 = arith.constant 0 : i32
    %c0_i32_0 = arith.constant 0 : i32
    %c0_i32_1 = arith.constant 0 : i32
    return %c0_i32, %c0_i32_0 : i32, i32
  }
  func.func @transform_12(%arg0: i32) -> (i32, i32) {
    %c0_i32 = arith.constant 0 : i32
    %c0_i32_0 = arith.constant 0 : i32
    %c0_i32_1 = arith.constant 0 : i32
    return %c0_i32, %c0_i32_0 : i32, i32
  }
  func.func @transform_13(%arg0: i32) -> (i32, i32) {
    %c0_i32 = arith.constant 0 : i32
    %c0_i32_0 = arith.constant 0 : i32
    %c0_i32_1 = arith.constant 0 : i32
    return %c0_i32, %c0_i32_0 : i32, i32
  }
  func.func @transform_14(%arg0: i32) -> (i32, i32) {
    %c0_i32 = arith.constant 0 : i32
    %c0_i32_0 = arith.constant 0 : i32
    %c0_i32_1 = arith.constant 0 : i32
    return %c0_i32, %c0_i32_0 : i32, i32
  }
  func.func @transform_15(%arg0: i32) -> (i32, i32) {
    %c0_i32 = arith.constant 0 : i32
    %c0_i32_0 = arith.constant 0 : i32
    return %c0_i32, %arg0 : i32, i32
  }
}

</mosaic_0001>

<bundles_post_ra>
// kernel: tpu_custom_call.1
= control target key start
LH: loop header
LB: loop body
LE: loop exit
PB: predicated region body
PF: predicated region fallthrough
CT: control target
= control target key end

     0   :  { %s2357_s0 = inlined_call_operand.vmem [shape: f32[8,256], index: 0, kind: input, shape index: {}]   ;;  %s2358_s1 = inlined_call_operand.vmem [shape: f32[32,8], index: 1, kind: input, shape index: {}]   ;;  %s2359_s2 = inlined_call_operand.vmem [shape: f32[32,1], index: 2, kind: input, shape index: {}]   ;;  %s2360_s3 = inlined_call_operand.vmem [shape: bf16[32,32], index: 3, kind: input, shape index: {}]   ;;  %s2361_s4 = inlined_call_operand.vmem [shape: f32[32,1], index: 4, kind: input, shape index: {}]   ;;  %s2362_s5 = inlined_call_operand.vmem [shape: bf16[32,32], index: 5, kind: input, shape index: {}]   ;;  %s2363_s6 = inlined_call_operand.vmem [shape: f32[32,1], index: 6, kind: input, shape index: {}]   ;;  %s2364_s7 = inlined_call_operand.vmem [shape: bf16[32,32], index: 7, kind: input, shape index: {}]   ;;  %s2365_s8 = inlined_call_operand.vmem [shape: f32[32,1], index: 8, kind: input, shape index: {}]   ;;  %s2366_s9 = inlined_call_operand.vmem [shape: bf16[32,32], index: 9, kind: input, shape index: {}]   ;;  %s2367_s10 = inlined_call_operand.vmem [shape: f32[32,1], index: 10, kind: input, shape index: {}]   ;;  %s2368_s11 = inlined_call_operand.vmem [shape: bf16[128,32], index: 11, kind: input, shape index: {}]   ;;  %s2369_s12 = inlined_call_operand.vmem [shape: f32[128,1], index: 12, kind: input, shape index: {}]   ;;  %s2370_s13 = inlined_call_operand.vmem [shape: f32[8,128], index: 13, kind: input, shape index: {}]   ;;  %s2371_s14 = inlined_call_operand.vmem [shape: f32[8,1], index: 14, kind: input, shape index: {}]   ;;  %s2372_s15 = inlined_call_operand.hbm [shape: f32[8,256], index: 15, kind: output, shape index: {}]  }
   0x1   :  { %2380 = sst [smem:[#allocation11_spill]] %s2372_s15 }
   0x2   :  { %20 = vsyncpa [#allocation3], 0 }
   0x3   :  { %22 = vsyncpa [#allocation3 + $0x1], 0  ;;  %s2044_s18 = smov 0   ;;  %s2046_s19 = smov 0  }
   0x4   :  { %s2048_s20 = smov 0   ;;  %s2050_s21 = smov 0  }
   0x5 LB: > { %2381 = sst [smem:[#allocation5_spill]] %s1946_s18  ;;  %s2065_s22 = sadd.s32 4294967295, %s1958_s21   ;;  %s1958_s21 = sphi %s2050_s21, %s2394_s21   ;;  %s1954_s20 = sphi %s2048_s20, %s2396_s20   ;;  %s1950_s19 = sphi %s2046_s19, %s2398_s19   ;;  %s1946_s18 = sphi %s2044_s18, %s2397_s18  }
   0x6   : > { %2382 = sst [smem:[#allocation6_spill]] %s1954_s20  ;;  %s1585_s23 = sadd.s32 4294967294, %s1958_s21  }
   0x7   : > { %2383 = sst [smem:[#allocation7_spill]] %s1958_s21  ;;  %s2069_s24 = sadd.s32 1, %s1958_s21  }
   0x8   : > { %2384 = sst [smem:[#allocation8_spill]] %s2069_s24  ;;  %s355_s25 = sadd.s32 1, %s1954_s20 }
   0x9   : > { %s352_s26 = ssub.s32 %s1958_s21, %s2069_s24  ;;  %p365_p0 = scmp.ne.s32.totalorder %s1954_s20, %s1950_s19 }
   0xa   : > { %p353_p1 = scmp.eq.s32.totalorder %s352_s26, 0  ;;  %p366_p2 = scmp.eq.s32.totalorder %s2065_s22, 1 }
   0xb   : > { %p371_p3 = scmp.ne.s32.totalorder %s1950_s19, %s1946_s18  ;;  %p372_p4 = scmp.eq.s32.totalorder %s1585_s23, 1 }
   0xc   : > { %s2080_s27 = scalar_select %p353_p1, %s1954_s20, %s355_s25  }
   0xd   : > { %p2082_p5 = por %p366_p2, %p365_p0  ;;  %p2086_p6 = por %p372_p4, %p371_p3 }
   0xe   : > { %2385 = sst [smem:[#allocation9_spill]] %s2080_s27  ;;  %p1588_p7 = scmp.ge.s32.totalorder %s1958_s21, 1 }
   0xf   : > { %s2387_s29 = scalar_select %p2086_p6, 1, 0 }
  0x10   : > { %p439_p8 = scmp.lt.s32.totalorder %s1958_s21, 3 }
  0x11   : > { %2388 = sst [smem:[#allocation10_spill]] %s2387_s29 }
  0x12   : > { %p440_p9 = pnand %p1588_p7, %p439_p8 }
  0x13   : > { %p486_p10 = scmp.lt.s32.totalorder (!%p440_p9), %s2065_s22, 1  ;;  %s483_s27 = sand.u32 (!%p440_p9), 1, %s1950_s19  }
  0x14   : > { %443 = sbr.rel (%p440_p9) target bundleno = 1667 (0x683), region = 80  ;;  %s1589_s20 = sshll.u32 (!%p440_p9), %s483_s27, 3 }
  0x15   : > { %s1628_s24 = sshll.u32 (!%p440_p9), %s2065_s22, 7  ;;  %s1513_s16 = scalar_lea.sflag (!%p440_p9), [#allocation3], %s483_s27 }
  0x19   : > { %v498_v0 = vld [vmem:[%s2359_s2 + $0x10] sm:$0xff]  ;;  %v491_v1 = vld [vmem:[%s2358_s1] sm:$0xff]  ;;  %vm520_vm0 = vcmask 64512   ;;  %v1960_v2 = vmov 0   ;;  %s487_s25 = scalar_select %p486_p10, %s2065_s22, 1  ;;  %v499_v4 = vld [vmem:[%s2359_s2 + $0x18] sm:$0xff] }
  0x1a   : > { %1816 = vset.pattern.permute.xlu0 %v1960_v2  ;;  %1681 = vmatprep.mubr.msk.f32.mxu0 %vm520_vm0, %v491_v1  ;;  %v496_v3 = vld [vmem:[%s2359_s2] sm:$0xff]  ;;  %v497_v5 = vld [vmem:[%s2359_s2 + $0x8] sm:$0xff]  ;;  %v493_v8 = vld [vmem:[%s2358_s1 + $0x10] sm:$0xff]  ;;  %vm658_vm1 = vcmask 261120   ;;  %vm1962_vm2 = vmmov 0   ;;  %s1963_s22 = smov [#allocation2]  }
  0x1b   : > { %512 = vperm.xlu0 %1816, %v498_v0   ;;  %1817 = vset.pattern.permute.xlu1 %v1960_v2  ;;  %s1590_s30 = sshll.u32 %s487_s25, 3  ;;  %v492_v7 = vld [vmem:[%s2358_s1 + $0x8] sm:$0xff]  ;;  %v626_v9 = vld [vmem:[%s2361_s4 + $0x10] sm:$0xff]  ;;  %v627_v10 = vld [vmem:[%s2361_s4 + $0x18] sm:$0xff]  ;;  %s485_s25 = scalar_lea.vmem [#allocation2], %s1589_s20 }
  0x1c   : > { %502 = vperm.xlu1 %1817, %v496_v3   ;;  %s489_s18 = scalar_lea.vmem %s2357_s0, %s1590_s30  ;;  %v494_v11 = vld [vmem:[%s2358_s1 + $0x18] sm:$0xff]  ;;  %v624_v12 = vld [vmem:[%s2361_s4] sm:$0xff]  ;;  %v625_v13 = vld [vmem:[%s2361_s4 + $0x8] sm:$0xff]  ;;  %s1526_s26 = sshll.u32 %s485_s25, 4  ;;  %s1527_s26 = int_to_ptr.vmem [resolvable:$true] %s1526_s26 }
  0x1d   : > { %v495_v6 = vld [vmem:[%s489_s18] sm:$0xff]  ;;  %v758_v14 = vld [vmem:[%s2363_s6 + $0x10] sm:$0xff]  ;;  %v759_v15 = vld [vmem:[%s2363_s6 + $0x18] sm:$0xff]  ;;  %s2389_s18 = sld [smem:[#allocation11_spill]]  ;;  %s1898_s17 = scalar_lea.vmem %s1527_s26, 128 }
  0x1e   : > { %1679 = vmatprep.subr.mxu0 %v495_v6  ;;  %v756_v16 = vld [vmem:[%s2363_s6] sm:$0xff]  ;;  %v757_v17 = vld [vmem:[%s2363_s6 + $0x8] sm:$0xff]  ;;  %v889_v18 = vld [vmem:[%s2365_s8 + $0x10] sm:$0xff]  ;;  %p1899_p11 = scmp.ne.s32.totalorder %s1527_s26, %s1898_s17  ;;  %s1902_s23 = sshll.u32 %s1963_s22, 4  ;;  %s1903_s23 = int_to_ptr.vmem [resolvable:$false] %s1902_s23 }
  0x1f   : > { %517 = vperm.xlu0 %1816, %v499_v4   ;;  %1680 = vmatpush3.msra.mxu0 %v495_v6  ;;  %v890_v19 = vld [vmem:[%s2365_s8 + $0x18] sm:$0xff]  ;;  %v887_v20 = vld [vmem:[%s2365_s8] sm:$0xff]  ;;  %v888_v21 = vld [vmem:[%s2365_s8 + $0x8] sm:$0xff]  ;;  %s1904_s20 = scalar_lea.vmem %s1903_s23, 256  ;;  %p1905_p0 = scmp.lt.s32.totalorder %s1527_s26, %s1903_s23 }
  0x20   : > { %507 = vperm.xlu1 %1817, %v497_v5   ;;  %1682 = vmatmul.mubr.msk.f32.vlgmr.msra.gmra.mxu0 %vm520_vm0, %v492_v7  ;;  %v1020_v22 = vld [vmem:[%s2367_s10 + $0x10] sm:$0xff]  ;;  %v1021_v23 = vld [vmem:[%s2367_s10 + $0x18] sm:$0xff]  ;;  %v1018_v24 = vld [vmem:[%s2367_s10] sm:$0xff]  ;;  %p1900_p12 = pnand %p1899_p11, %p2082_p5  ;;  %p1906_p1 = scmp.lt.s32.totalorder %s1904_s20, %s1898_s17 }
  0x21   : > { %1684 = vmatprep.mubr.msk.f32.mxu0 %vm520_vm0, %v493_v8  ;;  %v1019_v25 = vld [vmem:[%s2367_s10 + $0x8] sm:$0xff]  ;;  %v1176_v26 = vld [vmem:[%s2369_s12 + $0x78] sm:$0xff]  ;;  %v1175_v27 = vld [vmem:[%s2369_s12 + $0x70] sm:$0xff] }
  0x22   : > { %v1174_v28 = vld [vmem:[%s2369_s12 + $0x68] sm:$0xff]  ;;  %v1173_v29 = vld [vmem:[%s2369_s12 + $0x60] sm:$0xff]  ;;  %v1172_v30 = vld [vmem:[%s2369_s12 + $0x58] sm:$0xff]  ;;  %p1901_p13 = pneg %p1900_p12  ;;  %p1907_p2 = por %p1906_p1, %p1905_p0 }
  0x23   : > { %640 = vperm.xlu0 %1816, %v626_v9   ;;  %v1171_v31 = vld [vmem:[%s2369_s12 + $0x50] sm:$0xff]  ;;  %v1170_v32 = vld [vmem:[%s2369_s12 + $0x48] sm:$0xff]  ;;  %v1169_v33 = vld [vmem:[%s2369_s12 + $0x40] sm:$0xff]  ;;  %s2390_s30 = smov %s2389_s18  ;;  %s2322_s21 = scalar_lea.hbm %s2389_s18, %s1628_s24 }
  0x24   : > { %645 = vperm.xlu1 %1817, %v627_v10   ;;  %1685 = vmatmul.mubr.msk.f32.gmra.mxu0 %vm520_vm0, %v494_v11  ;;  %v1168_v34 = vld [vmem:[%s2369_s12 + $0x38] sm:$0xff]  ;;  %v1167_v35 = vld [vmem:[%s2369_s12 + $0x30] sm:$0xff]  ;;  %v1166_v36 = vld [vmem:[%s2369_s12 + $0x28] sm:$0xff]  ;;  %p1908_p3 = pnand %p1907_p2, %p1901_p13 }
  0x25   : > { %v1165_v37 = vld [vmem:[%s2369_s12 + $0x20] sm:$0xff]  ;;  %v1164_v38 = vld [vmem:[%s2369_s12 + $0x18] sm:$0xff]  ;;  %v1163_v39 = vld [vmem:[%s2369_s12 + $0x10] sm:$0xff] }
  0x26   : > { %v1162_v40 = vld [vmem:[%s2369_s12 + $0x8] sm:$0xff]  ;;  %v1161_v41 = vld [vmem:[%s2369_s12] sm:$0xff] }
  0x27   : > { %630 = vperm.xlu0 %1816, %v624_v12   ;;  %v1435_v42 = vld [vmem:[%s2371_s14] sm:$0xff]  ;;  %v1819_v58 = vld [vmem:[%s2360_s3 + $0x8] sm:$0xff]  }
  0x28   : > { %635 = vperm.xlu1 %1817, %v625_v13   ;;  %v1818_v43 = vld [vmem:[%s2360_s3] sm:$0xff]  }
  0x29   : > { %1691 = vmatprep.mubr.msk.bf16.mxu1 %vm658_vm1, %v1818_v43  ;;  %v1820_v59 = vld [vmem:[%s2362_s5] sm:$0xff]  }
  0x2a   : > { %1699 = vmatprep.mubr.msk.bf16.mxu0 %vm658_vm1, %v1820_v59 }
  0x2b   : > { %772 = vperm.xlu0 %1816, %v758_v14  }
  0x2c   : > { %777 = vperm.xlu1 %1817, %v759_v15  }
  0x2f   : > { %762 = vperm.xlu0 %1816, %v756_v16  }
  0x30   : > { %767 = vperm.xlu1 %1817, %v757_v17  }
  0x33   : > { %903 = vperm.xlu0 %1816, %v889_v18  }
  0x34   : > { %908 = vperm.xlu1 %1817, %v890_v19  }
  0x37   : > { %893 = vperm.xlu0 %1816, %v887_v20  }
  0x38   : > { %898 = vperm.xlu1 %1817, %v888_v21  }
  0x3b   : > { %1034 = vperm.xlu0 %1816, %v1020_v22  }
  0x3c   : > { %1039 = vperm.xlu1 %1817, %v1021_v23  }
  0x3f   : > { %1024 = vperm.xlu0 %1816, %v1018_v24  }
  0x40   : > { %1029 = vperm.xlu1 %1817, %v1019_v25  }
  0x43   : > { %1254 = vperm.xlu0 %1816, %v1176_v26  }
  0x44   : > { %1249 = vperm.xlu1 %1817, %v1175_v27  }
  0x47   : > { %1244 = vperm.xlu0 %1816, %v1174_v28  }
  0x48   : > { %1239 = vperm.xlu1 %1817, %v1173_v29  }
  0x4b   : > { %1234 = vperm.xlu0 %1816, %v1172_v30  }
  0x4c   : > { %1229 = vperm.xlu1 %1817, %v1171_v31  }
  0x4f   : > { %1224 = vperm.xlu0 %1816, %v1170_v32  }
  0x50   : > { %1219 = vperm.xlu1 %1817, %v1169_v33  }
  0x53   : > { %1214 = vperm.xlu0 %1816, %v1168_v34  }
  0x54   : > { %1209 = vperm.xlu1 %1817, %v1167_v35  }
  0x57   : > { %1204 = vperm.xlu0 %1816, %v1166_v36  }
  0x58   : > { %1199 = vperm.xlu1 %1817, %v1165_v37  }
  0x5b   : > { %1194 = vperm.xlu0 %1816, %v1164_v38  }
  0x5c   : > { %1189 = vperm.xlu1 %1817, %v1163_v39  }
  0x5f   : > { %1184 = vperm.xlu0 %1816, %v1162_v40  }
  0x60   : > { %1179 = vperm.xlu1 %1817, %v1161_v41  }
  0x63   : > { %1438 = vperm.xlu0 %1816, %v1435_v42  }
  0x96   : > { %v513_v44 = vpop.permute.xlu0 %512 }
  0x97   : > { %v503_v46 = vpop.permute.xlu1 %502 }
  0x9a   : > { %v518_v49 = vpop.permute.xlu0 %517 }
  0x9b   : > { %v508_v54 = vpop.permute.xlu1 %507 }
  0x9e   : > { %v641_v60 = vpop.permute.xlu0 %640 }
  0x9f   : > { %v646_v61 = vpop.permute.xlu1 %645 }
  0xa2   : > { %v631_v0 = vpop.permute.xlu0 %630 }
  0xa3   : > { %v636_v8 = vpop.permute.xlu1 %635 }
  0xe0   : > { %v1683_v45 = vpop.f32.mrf.mxu0 }
  0xe1   : > { %v605_v55 = vadd.f32 %v1683_v45, %v508_v54 }
  0xe2   : > { %v599_v47 = vpop.f32.mrf.mxu0 }
  0xe3   : > { %v600_v51 = vadd.f32 %v599_v47, %v503_v46  ;;  %v1821_v46 = vld [vmem:[%s2362_s5 + $0x8] sm:$0xff]   ;;  %v1822_v47 = vld [vmem:[%s2364_s7] sm:$0xff]  }
  0xe4   : > { %v1686_v48 = vpop.f32.mrf.mxu0 }
  0xe5   : > { %v615_v52 = vadd.f32 %v1686_v48, %v518_v49  ;;  %v622_v57 = vpack.c.bf16 %v605_v55, %v600_v51  ;;  %v773_v48 = vpop.permute.xlu0 %772  ;;  %v778_v49 = vpop.permute.xlu1 %777 }
  0xe6   : > { %v609_v50 = vpop.f32.mrf.mxu0 }
  0xe7   : > { %v610_v53 = vadd.f32 %v609_v50, %v513_v44 }
  0xe9   : > { %v623_v56 = vpack.c.bf16 %v615_v52, %v610_v53  ;;  %v763_v52 = vpop.permute.xlu0 %762 }
  0xeb   : > { %1687 = vmatprep.subr.bf16.mxu1 %v623_v56 }
  0xec   : > { %1688 = vmatpush3.bf16.msra.mxu1 %v623_v56 }
  0xed   : > { %1689 = vmatprep.subr.bf16.mxu1 %v622_v57 }
  0xf0   : > { %1690 = vmatpush3.bf16.msra.mxu1 %v622_v57 }
  0xf3   : > { %1692 = vmatmul.mubr.msk.bf16.vlgmr.msra.gmra.mxu1 %vm658_vm1, %v1819_v58 }
  0xf4   : > { %1707 = vmatprep.mubr.msk.bf16.mxu1 %vm658_vm1, %v1822_v47 }
 0x1b3   : > { %v1693_v62 = vpop.f32.mrf.mxu1 }
 0x1b4   : > { %v708_v63 = vadd.f32 %v1693_v62, %v641_v60  ;;  %v768_v60 = vpop.permute.xlu1 %767 }
 0x1b5   : > { %v699_v1 = vpop.f32.mrf.mxu1 }
 0x1b6   : > { %v720_v2 = vmul.f32 %v708_v63, %v708_v63  ;;  %v700_v3 = vadd.f32 %v699_v1, %v631_v0  ;;  %v716_v32 = vmul.f32 0.5, %v708_v63 }
 0x1b7   : > { %v1694_v4 = vpop.f32.mrf.mxu1 }
 0x1b8   : > { %v724_v5 = vmul.f32 %v720_v2, %v708_v63  ;;  %v718_v6 = vmul.f32 %v700_v3, %v700_v3  ;;  %v711_v7 = vadd.f32 %v1694_v4, %v646_v61  ;;  %v714_v37 = vmul.f32 0.5, %v700_v3 }
 0x1b9   : > { %v702_v9 = vpop.f32.mrf.mxu1 }
 0x1ba   : > { %v728_v10 = vmul.f32 0.044715, %v724_v5  ;;  %v722_v11 = vmul.f32 %v718_v6, %v700_v3  ;;  %v721_v12 = vmul.f32 %v711_v7, %v711_v7  ;;  %v703_v13 = vadd.f32 %v702_v9, %v636_v8 }
 0x1bb   : > { %v717_v33 = vmul.f32 0.5, %v711_v7 }
 0x1bc   : > { %v732_v14 = vadd.f32 %v728_v10, %v708_v63  ;;  %v726_v15 = vmul.f32 0.044715, %v722_v11  ;;  %v725_v16 = vmul.f32 %v721_v12, %v711_v7  ;;  %v719_v17 = vmul.f32 %v703_v13, %v703_v13 }
 0x1bd   : > { %v715_v40 = vmul.f32 0.5, %v703_v13 }
 0x1be   : > { %v736_v18 = vmul.f32 0.7978846, %v732_v14  ;;  %v730_v19 = vadd.f32 %v726_v15, %v700_v3  ;;  %v729_v20 = vmul.f32 0.044715, %v725_v16  ;;  %v723_v21 = vmul.f32 %v719_v17, %v703_v13 }
 0x1c0   : > { %1834 = vtanh.f32 %v736_v18  ;;  %v734_v22 = vmul.f32 0.7978846, %v730_v19  ;;  %v733_v23 = vadd.f32 %v729_v20, %v711_v7  ;;  %v727_v24 = vmul.f32 0.044715, %v723_v21 }
 0x1c2   : > { %1836 = vtanh.f32 %v734_v22  ;;  %v737_v25 = vmul.f32 0.7978846, %v733_v23  ;;  %v731_v26 = vadd.f32 %v727_v24, %v703_v13 }
 0x1c4   : > { %1838 = vtanh.f32 %v737_v25  ;;  %v735_v27 = vmul.f32 0.7978846, %v731_v26 }
 0x1c6   : > { %1840 = vtanh.f32 %v735_v27 }
 0x1cd   : > { %v1835_v28 = vpop.eup %1834 }
 0x1ce   : > { %v744_v30 = vadd.f32 1.0, %v1835_v28 }
 0x1cf   : > { %v1837_v29 = vpop.eup %1836 }
 0x1d0   : > { %v742_v35 = vadd.f32 1.0, %v1837_v29  ;;  %v748_v38 = vmul.f32 %v744_v30, %v716_v32 }
 0x1d1   : > { %v1839_v31 = vpop.eup %1838 }
 0x1d2   : > { %v745_v34 = vadd.f32 1.0, %v1839_v31  ;;  %v746_v43 = vmul.f32 %v742_v35, %v714_v37  ;;  %v1824_v35 = vld [vmem:[%s2366_s9] sm:$0xff]   ;;  %v909_v37 = vpop.permute.xlu1 %908 }
 0x1d3   : > { %v1841_v36 = vpop.eup %1840 }
 0x1d4   : > { %v749_v39 = vmul.f32 %v745_v34, %v717_v33  ;;  %v743_v41 = vadd.f32 1.0, %v1841_v36  ;;  %v1823_v34 = vld [vmem:[%s2364_s7 + $0x8] sm:$0xff]   ;;  %v904_v36 = vpop.permute.xlu0 %903 }
 0x1d6   : > { %v755_v42 = vpack.c.bf16 %v749_v39, %v748_v38  ;;  %v747_v44 = vmul.f32 %v743_v41, %v715_v40 }
 0x1d8   : > { %1695 = vmatprep.subr.bf16.mxu0 %v755_v42  ;;  %v754_v45 = vpack.c.bf16 %v747_v44, %v746_v43  ;;  %v894_v40 = vpop.permute.xlu0 %893 }
 0x1d9   : > { %1696 = vmatpush3.bf16.msra.mxu0 %v755_v42 }
 0x1da   : > { %1697 = vmatprep.subr.bf16.mxu0 %v754_v45 }
 0x1dd   : > { %1698 = vmatpush3.bf16.msra.mxu0 %v754_v45 }
 0x1e0   : > { %1700 = vmatmul.mubr.msk.bf16.vlgmr.msra.gmra.mxu0 %vm658_vm1, %v1821_v46 }
 0x1e1   : > { %1715 = vmatprep.mubr.msk.bf16.mxu0 %vm658_vm1, %v1824_v35 }
 0x2a0   : > { %v1701_v50 = vpop.f32.mrf.mxu0 }
 0x2a1   : > { %v839_v51 = vadd.f32 %v1701_v50, %v773_v48  ;;  %v899_v48 = vpop.permute.xlu1 %898 }
 0x2a2   : > { %v830_v53 = vpop.f32.mrf.mxu0 }
 0x2a3   : > { %v851_v54 = vmul.f32 %v839_v51, %v839_v51  ;;  %v831_v55 = vadd.f32 %v830_v53, %v763_v52  ;;  %v847_v20 = vmul.f32 0.5, %v839_v51 }
 0x2a4   : > { %v1702_v56 = vpop.f32.mrf.mxu0 }
 0x2a5   : > { %v855_v57 = vmul.f32 %v851_v54, %v839_v51  ;;  %v849_v58 = vmul.f32 %v831_v55, %v831_v55  ;;  %v842_v59 = vadd.f32 %v1702_v56, %v778_v49  ;;  %v845_v25 = vmul.f32 0.5, %v831_v55 }
 0x2a6   : > { %v833_v61 = vpop.f32.mrf.mxu0 }
 0x2a7   : > { %v859_v62 = vmul.f32 0.044715, %v855_v57  ;;  %v853_v63 = vmul.f32 %v849_v58, %v831_v55  ;;  %v852_v0 = vmul.f32 %v842_v59, %v842_v59  ;;  %v834_v1 = vadd.f32 %v833_v61, %v768_v60 }
 0x2a8   : > { %v848_v21 = vmul.f32 0.5, %v842_v59 }
 0x2a9   : > { %v863_v2 = vadd.f32 %v859_v62, %v839_v51  ;;  %v857_v3 = vmul.f32 0.044715, %v853_v63  ;;  %v856_v4 = vmul.f32 %v852_v0, %v842_v59  ;;  %v850_v5 = vmul.f32 %v834_v1, %v834_v1 }
 0x2aa   : > { %v846_v28 = vmul.f32 0.5, %v834_v1 }
 0x2ab   : > { %v867_v6 = vmul.f32 0.7978846, %v863_v2  ;;  %v861_v7 = vadd.f32 %v857_v3, %v831_v55  ;;  %v860_v8 = vmul.f32 0.044715, %v856_v4  ;;  %v854_v9 = vmul.f32 %v850_v5, %v834_v1 }
 0x2ad   : > { %1842 = vtanh.f32 %v867_v6  ;;  %v865_v10 = vmul.f32 0.7978846, %v861_v7  ;;  %v864_v11 = vadd.f32 %v860_v8, %v842_v59  ;;  %v858_v12 = vmul.f32 0.044715, %v854_v9 }
 0x2af   : > { %1844 = vtanh.f32 %v865_v10  ;;  %v868_v13 = vmul.f32 0.7978846, %v864_v11  ;;  %v862_v14 = vadd.f32 %v858_v12, %v834_v1 }
 0x2b1   : > { %1846 = vtanh.f32 %v868_v13  ;;  %v866_v15 = vmul.f32 0.7978846, %v862_v14 }
 0x2b3   : > { %1848 = vtanh.f32 %v866_v15 }
 0x2ba   : > { %v1843_v16 = vpop.eup %1842 }
 0x2bb   : > { %v875_v18 = vadd.f32 1.0, %v1843_v16 }
 0x2bc   : > { %v1845_v17 = vpop.eup %1844 }
 0x2bd   : > { %v873_v23 = vadd.f32 1.0, %v1845_v17  ;;  %v879_v26 = vmul.f32 %v875_v18, %v847_v20 }
 0x2be   : > { %v1847_v19 = vpop.eup %1846 }
 0x2bf   : > { %v876_v22 = vadd.f32 1.0, %v1847_v19  ;;  %v877_v31 = vmul.f32 %v873_v23, %v845_v25  ;;  %v1826_v23 = vld [vmem:[%s2368_s11] sm:$0xff]   ;;  %v1040_v25 = vpop.permute.xlu1 %1039 }
 0x2c0   : > { %v1849_v24 = vpop.eup %1848 }
 0x2c1   : > { %v880_v27 = vmul.f32 %v876_v22, %v848_v21  ;;  %v874_v29 = vadd.f32 1.0, %v1849_v24  ;;  %v1825_v22 = vld [vmem:[%s2366_s9 + $0x8] sm:$0xff]   ;;  %v1035_v24 = vpop.permute.xlu0 %1034 }
 0x2c3   : > { %v886_v30 = vpack.c.bf16 %v880_v27, %v879_v26  ;;  %v878_v32 = vmul.f32 %v874_v29, %v846_v28 }
 0x2c5   : > { %1703 = vmatprep.subr.bf16.mxu1 %v886_v30  ;;  %v885_v33 = vpack.c.bf16 %v878_v32, %v877_v31  ;;  %v1025_v28 = vpop.permute.xlu0 %1024 }
 0x2c6   : > { %1704 = vmatpush3.bf16.msra.mxu1 %v886_v30 }
 0x2c7   : > { %1705 = vmatprep.subr.bf16.mxu1 %v885_v33 }
 0x2ca   : > { %1706 = vmatpush3.bf16.msra.mxu1 %v885_v33 }
 0x2cd   : > { %1708 = vmatmul.mubr.msk.bf16.vlgmr.msra.gmra.mxu1 %vm658_vm1, %v1823_v34 }
 0x2ce   : > { %1723 = vmatprep.mubr.msk.bf16.mxu1 %vm658_vm1, %v1826_v23 }
 0x38d   : > { %v1709_v38 = vpop.f32.mrf.mxu1 }
 0x38e   : > { %v970_v39 = vadd.f32 %v1709_v38, %v904_v36  ;;  %v1030_v36 = vpop.permute.xlu1 %1029 }
 0x38f   : > { %v961_v41 = vpop.f32.mrf.mxu1 }
 0x390   : > { %v982_v42 = vmul.f32 %v970_v39, %v970_v39  ;;  %v962_v43 = vadd.f32 %v961_v41, %v894_v40  ;;  %v978_v8 = vmul.f32 0.5, %v970_v39 }
 0x391   : > { %v1710_v44 = vpop.f32.mrf.mxu1 }
 0x392   : > { %v986_v45 = vmul.f32 %v982_v42, %v970_v39  ;;  %v980_v46 = vmul.f32 %v962_v43, %v962_v43  ;;  %v973_v47 = vadd.f32 %v1710_v44, %v909_v37  ;;  %v976_v13 = vmul.f32 0.5, %v962_v43 }
 0x393   : > { %v964_v49 = vpop.f32.mrf.mxu1 }
 0x394   : > { %v990_v50 = vmul.f32 0.044715, %v986_v45  ;;  %v984_v51 = vmul.f32 %v980_v46, %v962_v43  ;;  %v983_v52 = vmul.f32 %v973_v47, %v973_v47  ;;  %v965_v53 = vadd.f32 %v964_v49, %v899_v48 }
 0x395   : > { %v979_v9 = vmul.f32 0.5, %v973_v47 }
 0x396   : > { %v994_v54 = vadd.f32 %v990_v50, %v970_v39  ;;  %v988_v55 = vmul.f32 0.044715, %v984_v51  ;;  %v987_v56 = vmul.f32 %v983_v52, %v973_v47  ;;  %v981_v57 = vmul.f32 %v965_v53, %v965_v53 }
 0x397   : > { %v977_v16 = vmul.f32 0.5, %v965_v53 }
 0x398   : > { %v998_v58 = vmul.f32 0.7978846, %v994_v54  ;;  %v992_v59 = vadd.f32 %v988_v55, %v962_v43  ;;  %v991_v60 = vmul.f32 0.044715, %v987_v56  ;;  %v985_v61 = vmul.f32 %v981_v57, %v965_v53 }
 0x39a   : > { %1850 = vtanh.f32 %v998_v58  ;;  %v996_v62 = vmul.f32 0.7978846, %v992_v59  ;;  %v995_v63 = vadd.f32 %v991_v60, %v973_v47  ;;  %v989_v0 = vmul.f32 0.044715, %v985_v61 }
 0x39c   : > { %1852 = vtanh.f32 %v996_v62  ;;  %v999_v1 = vmul.f32 0.7978846, %v995_v63  ;;  %v993_v2 = vadd.f32 %v989_v0, %v965_v53 }
 0x39e   : > { %1854 = vtanh.f32 %v999_v1  ;;  %v997_v3 = vmul.f32 0.7978846, %v993_v2 }
 0x3a0   : > { %1856 = vtanh.f32 %v997_v3 }
 0x3a7   : > { %v1851_v4 = vpop.eup %1850 }
 0x3a8   : > { %v1006_v6 = vadd.f32 1.0, %v1851_v4 }
 0x3a9   : > { %v1853_v5 = vpop.eup %1852 }
 0x3aa   : > { %v1004_v11 = vadd.f32 1.0, %v1853_v5  ;;  %v1010_v14 = vmul.f32 %v1006_v6, %v978_v8 }
 0x3ab   : > { %v1855_v7 = vpop.eup %1854 }
 0x3ac   : > { %v1007_v10 = vadd.f32 1.0, %v1855_v7  ;;  %v1008_v19 = vmul.f32 %v1004_v11, %v976_v13  ;;  %v1828_v11 = vld [vmem:[%s2368_s11 + $0x10] sm:$0xff]   ;;  %v1830_v13 = vld [vmem:[%s2368_s11 + $0x20] sm:$0xff]  }
 0x3ad   : > { %v1857_v12 = vpop.eup %1856 }
 0x3ae   : > { %v1011_v15 = vmul.f32 %v1007_v10, %v979_v9  ;;  %v1005_v17 = vadd.f32 1.0, %v1857_v12  ;;  %v1827_v10 = vld [vmem:[%s2368_s11 + $0x8] sm:$0xff]   ;;  %v1829_v12 = vld [vmem:[%s2368_s11 + $0x18] sm:$0xff]  }
 0x3b0   : > { %v1017_v18 = vpack.c.bf16 %v1011_v15, %v1010_v14  ;;  %v1009_v20 = vmul.f32 %v1005_v17, %v977_v16  ;;  %v1831_v14 = vld [vmem:[%s2368_s11 + $0x28] sm:$0xff]   ;;  %v1832_v15 = vld [vmem:[%s2368_s11 + $0x30] sm:$0xff]   ;;  %v1833_v16 = vld [vmem:[%s2368_s11 + $0x38] sm:$0xff]   ;;  %v1961_v17 = vmov 0.0  }
 0x3b2   : > { %1711 = vmatprep.subr.bf16.mxu0 %v1017_v18  ;;  %v1016_v21 = vpack.c.bf16 %v1009_v20, %v1008_v19 }
 0x3b3   : > { %1712 = vmatpush3.bf16.msra.mxu0 %v1017_v18 }
 0x3b4   : > { %1713 = vmatprep.subr.bf16.mxu0 %v1016_v21 }
 0x3b7   : > { %1714 = vmatpush3.bf16.msra.mxu0 %v1016_v21 }
 0x3b8   : > { %1739 = vmatprep.subr.mxu0 %v1961_v17 }
 0x3ba   : > { %1716 = vmatmul.mubr.msk.bf16.vlgmr.msra.gmra.mxu0 %vm658_vm1, %v1825_v22 }
 0x3bb   : > { %1771 = vmatprep.mubr.msk.f32.mxu0 %vm1962_vm2, %v1961_v17 }
 0x47a   : > { %v1717_v26 = vpop.f32.mrf.mxu0 }
 0x47b   : > { %v1101_v27 = vadd.f32 %v1717_v26, %v1035_v24  ;;  %v1255_v24 = vpop.permute.xlu0 %1254  ;;  %v1250_v26 = vpop.permute.xlu1 %1249 }
 0x47c   : > { %v1092_v29 = vpop.f32.mrf.mxu0 }
 0x47d   : > { %v1113_v30 = vmul.f32 %v1101_v27, %v1101_v27  ;;  %v1093_v31 = vadd.f32 %v1092_v29, %v1025_v28  ;;  %v1109_v60 = vmul.f32 0.5, %v1101_v27 }
 0x47e   : > { %v1718_v32 = vpop.f32.mrf.mxu0 }
 0x47f   : > { %v1117_v33 = vmul.f32 %v1113_v30, %v1101_v27  ;;  %v1111_v34 = vmul.f32 %v1093_v31, %v1093_v31  ;;  %v1104_v35 = vadd.f32 %v1718_v32, %v1040_v25  ;;  %v1107_v1 = vmul.f32 0.5, %v1093_v31  ;;  %v1245_v29 = vpop.permute.xlu0 %1244 }
 0x480   : > { %v1095_v37 = vpop.f32.mrf.mxu0 }
 0x481   : > { %v1121_v38 = vmul.f32 0.044715, %v1117_v33  ;;  %v1115_v39 = vmul.f32 %v1111_v34, %v1093_v31  ;;  %v1114_v40 = vmul.f32 %v1104_v35, %v1104_v35  ;;  %v1096_v41 = vadd.f32 %v1095_v37, %v1030_v36 }
 0x482   : > { %v1110_v61 = vmul.f32 0.5, %v1104_v35 }
 0x483   : > { %v1125_v42 = vadd.f32 %v1121_v38, %v1101_v27  ;;  %v1119_v43 = vmul.f32 0.044715, %v1115_v39  ;;  %v1118_v44 = vmul.f32 %v1114_v40, %v1104_v35  ;;  %v1112_v45 = vmul.f32 %v1096_v41, %v1096_v41  ;;  %v1235_v34 = vpop.permute.xlu0 %1234 }
 0x484   : > { %v1108_v4 = vmul.f32 0.5, %v1096_v41 }
 0x485   : > { %v1129_v46 = vmul.f32 0.7978846, %v1125_v42  ;;  %v1123_v47 = vadd.f32 %v1119_v43, %v1093_v31  ;;  %v1122_v48 = vmul.f32 0.044715, %v1118_v44  ;;  %v1116_v49 = vmul.f32 %v1112_v45, %v1096_v41  ;;  %v1240_v31 = vpop.permute.xlu1 %1239 }
 0x487   : > { %1858 = vtanh.f32 %v1129_v46  ;;  %v1127_v50 = vmul.f32 0.7978846, %v1123_v47  ;;  %v1126_v51 = vadd.f32 %v1122_v48, %v1104_v35  ;;  %v1120_v52 = vmul.f32 0.044715, %v1116_v49 }
 0x489   : > { %1860 = vtanh.f32 %v1127_v50  ;;  %v1130_v53 = vmul.f32 0.7978846, %v1126_v51  ;;  %v1124_v54 = vadd.f32 %v1120_v52, %v1096_v41  ;;  %v1230_v36 = vpop.permute.xlu1 %1229  ;;  %v1225_v41 = vpop.permute.xlu0 %1224 }
 0x48b   : > { %1862 = vtanh.f32 %v1130_v53  ;;  %v1128_v55 = vmul.f32 0.7978846, %v1124_v54 }
 0x48d   : > { %1864 = vtanh.f32 %v1128_v55  ;;  %v1220_v44 = vpop.permute.xlu1 %1219  ;;  %v1215_v47 = vpop.permute.xlu0 %1214 }
 0x491   : > { %v1210_v49 = vpop.permute.xlu1 %1209  ;;  %v1205_v52 = vpop.permute.xlu0 %1204 }
 0x494   : > { %v1859_v56 = vpop.eup %1858 }
 0x495   : > { %v1137_v58 = vadd.f32 1.0, %v1859_v56  ;;  %v1200_v55 = vpop.permute.xlu1 %1199 }
 0x496   : > { %v1861_v57 = vpop.eup %1860 }
 0x497   : > { %v1135_v63 = vadd.f32 1.0, %v1861_v57  ;;  %v1141_v2 = vmul.f32 %v1137_v58, %v1109_v60  ;;  %v1195_v60 = vpop.permute.xlu0 %1194 }
 0x498   : > { %v1863_v59 = vpop.eup %1862 }
 0x499   : > { %v1138_v62 = vadd.f32 1.0, %v1863_v59  ;;  %v1139_v7 = vmul.f32 %v1135_v63, %v1107_v1  ;;  %v1190_v63 = vpop.permute.xlu1 %1189 }
 0x49a   : > { %v1865_v0 = vpop.eup %1864 }
 0x49b   : > { %v1142_v3 = vmul.f32 %v1138_v62, %v1110_v61  ;;  %v1136_v5 = vadd.f32 1.0, %v1865_v0 }
 0x49d   : > { %v1160_v6 = vpack.c.bf16 %v1142_v3, %v1141_v2  ;;  %v1140_v8 = vmul.f32 %v1136_v5, %v1108_v4  ;;  %v1185_v4 = vpop.permute.xlu0 %1184 }
 0x49f   : > { %1719 = vmatprep.subr.bf16.mxu1 %v1160_v6  ;;  %v1159_v9 = vpack.c.bf16 %v1140_v8, %v1139_v7  ;;  %v1180_v7 = vpop.permute.xlu1 %1179 }
 0x4a0   : > { %1720 = vmatpush3.bf16.msra.mxu1 %v1160_v6 }
 0x4a1   : > { %1721 = vmatprep.subr.bf16.mxu1 %v1159_v9 }
 0x4a4   : > { %1722 = vmatpush3.bf16.msra.mxu1 %v1159_v9 }
 0x4a7   : > { %1724 = vmatmul.mubr.msk.bf16.vlgmr.msra.gmra.mxu1 %vm658_vm1, %v1827_v10 }
 0x4a8   : > { %1727 = vmatprep.mubr.msk.bf16.mxu1 %vm658_vm1, %v1828_v11 }
 0x4af   : > { %1728 = vmatmul.mubr.msk.bf16.gmra.mxu1 %vm658_vm1, %v1829_v12 }
 0x4b0   : > { %1731 = vmatprep.mubr.msk.bf16.mxu1 %vm658_vm1, %v1830_v13 }
 0x4b7   : > { %1732 = vmatmul.mubr.msk.bf16.gmra.mxu1 %vm658_vm1, %v1831_v14 }
 0x4b8   : > { %1735 = vmatprep.mubr.msk.bf16.mxu1 %vm658_vm1, %v1832_v15 }
 0x4bf   : > { %1736 = vmatmul.mubr.msk.bf16.gmra.mxu1 %vm658_vm1, %v1833_v16 }
 0x567   : > { %v2290_v18 = vpop.f32.mrf.mxu1 }
 0x568   : > { %v1364_v2 = vadd.f32 %v2290_v18, %v1190_v63  ;;  %v1434_v18 = vld [vmem:[%s2370_s13] sm:$0xff] }
 0x569   : > { %v2292_v19 = vpop.f32.mrf.mxu1 }
 0x56a   : > { %v1356_v8 = vadd.f32 %v2292_v19, %v1180_v7 }
 0x56b   : > { %v1726_v20 = vpop.f32.mrf.mxu1 }
 0x56c   : > { %v1367_v0 = vadd.f32 %v1726_v20, %v1195_v60  ;;  %v1439_v20 = vpop.permute.xlu0 %1438 }
 0x56d   : > { %v2294_v21 = vpop.f32.mrf.mxu1 }
 0x56e   : > { %v1359_v5 = vadd.f32 %v2294_v21, %v1185_v4 }
 0x56f   : > { %v1729_v22 = vpop.f32.mrf.mxu1 }
 0x570   : > { %v1380_v56 = vadd.f32 %v1729_v22, %v1210_v49 }
 0x571   : > { %v1371_v23 = vpop.f32.mrf.mxu1 }
 0x572   : > { %v1372_v61 = vadd.f32 %v1371_v23, %v1200_v55 }
 0x573   : > { %v1730_v25 = vpop.f32.mrf.mxu1 }
 0x574   : > { %v1383_v53 = vadd.f32 %v1730_v25, %v1215_v47 }
 0x575   : > { %v1374_v27 = vpop.f32.mrf.mxu1 }
 0x576   : > { %v1375_v58 = vadd.f32 %v1374_v27, %v1205_v52 }
 0x577   : > { %v1733_v28 = vpop.f32.mrf.mxu1 }
 0x578   : > { %v1396_v48 = vadd.f32 %v1733_v28, %v1230_v36 }
 0x579   : > { %v1387_v30 = vpop.f32.mrf.mxu1 }
 0x57a   : > { %v1388_v51 = vadd.f32 %v1387_v30, %v1220_v44 }
 0x57b   : > { %v1734_v32 = vpop.f32.mrf.mxu1 }
 0x57c   : > { %v1399_v46 = vadd.f32 %v1734_v32, %v1235_v34 }
 0x57d   : > { %v1390_v33 = vpop.f32.mrf.mxu1 }
 0x57e   : > { %v1391_v50 = vadd.f32 %v1390_v33, %v1225_v41 }
 0x57f   : > { %v1737_v35 = vpop.f32.mrf.mxu1 }
 0x580   : > { %v1412_v39 = vadd.f32 %v1737_v35, %v1250_v26 }
 0x581   : > { %v1403_v37 = vpop.f32.mrf.mxu1 }
 0x582   : > { %v1404_v45 = vadd.f32 %v1403_v37, %v1240_v31 }
 0x583   : > { %v1738_v38 = vpop.f32.mrf.mxu1 }
 0x584   : > { %v1415_v40 = vadd.f32 %v1738_v38, %v1255_v24 }
 0x585   : > { %v1406_v42 = vpop.f32.mrf.mxu1 }
 0x586   : > { %1866 = vtanh.f32 %v1415_v40  ;;  %v1407_v43 = vadd.f32 %v1406_v42, %v1245_v29 }
 0x587   : > { %1868 = vtanh.f32 %v1412_v39 }
 0x588   : > { %1870 = vtanh.f32 %v1407_v43 }
 0x589   : > { %1872 = vtanh.f32 %v1404_v45 }
 0x58a   : > { %1874 = vtanh.f32 %v1399_v46 }
 0x58b   : > { %1876 = vtanh.f32 %v1396_v48 }
 0x58c   : > { %1878 = vtanh.f32 %v1391_v50 }
 0x58d   : > { %1880 = vtanh.f32 %v1388_v51 }
 0x58e   : > { %1882 = vtanh.f32 %v1383_v53 }
 0x58f   : > { %1884 = vtanh.f32 %v1380_v56 }
 0x590   : > { %1886 = vtanh.f32 %v1375_v58 }
 0x591   : > { %1888 = vtanh.f32 %v1372_v61 }
 0x592   : > { %1890 = vtanh.f32 %v1367_v0 }
 0x593   : > { %v1867_v54 = vpop.eup %1866  ;;  %1892 = vtanh.f32 %v1364_v2 }
 0x594   : > { %1740 = vmatpush3.msra.mxu0 %v1867_v54  ;;  %v1869_v57 = vpop.eup %1868  ;;  %1894 = vtanh.f32 %v1359_v5 }
 0x595   : > { %1741 = vmatprep.subr.mxu0 %v1961_v17  ;;  %v1871_v59 = vpop.eup %1870  ;;  %1896 = vtanh.f32 %v1356_v8 }
 0x596   : > { %1742 = vmatpush3.msra.mxu0 %v1869_v57  ;;  %v1873_v62 = vpop.eup %1872 }
 0x597   : > { %1743 = vmatprep.subr.mxu0 %v1961_v17  ;;  %v1875_v1 = vpop.eup %1874 }
 0x598   : > { %1744 = vmatpush3.msra.mxu0 %v1871_v59  ;;  %v1877_v3 = vpop.eup %1876 }
 0x599   : > { %1745 = vmatprep.subr.mxu0 %v1961_v17  ;;  %v1879_v6 = vpop.eup %1878 }
 0x59a   : > { %1746 = vmatpush3.msra.mxu0 %v1873_v62  ;;  %v1881_v9 = vpop.eup %1880 }
 0x59b   : > { %1747 = vmatprep.subr.mxu0 %v1961_v17  ;;  %v1883_v10 = vpop.eup %1882 }
 0x59c   : > { %1748 = vmatpush3.msra.mxu0 %v1875_v1  ;;  %v1885_v11 = vpop.eup %1884 }
 0x59d   : > { %1749 = vmatprep.subr.mxu0 %v1961_v17  ;;  %v1887_v12 = vpop.eup %1886 }
 0x59e   : > { %1750 = vmatpush3.msra.mxu0 %v1877_v3  ;;  %v1889_v13 = vpop.eup %1888 }
 0x59f   : > { %1751 = vmatprep.subr.mxu0 %v1961_v17  ;;  %v1891_v14 = vpop.eup %1890 }
 0x5a0   : > { %1752 = vmatpush3.msra.mxu0 %v1879_v6  ;;  %v1893_v15 = vpop.eup %1892 }
 0x5a1   : > { %1753 = vmatprep.subr.mxu0 %v1961_v17  ;;  %v1895_v16 = vpop.eup %1894 }
 0x5a2   : > { %1754 = vmatpush3.msra.mxu0 %v1881_v9  ;;  %v1897_v19 = vpop.eup %1896 }
 0x5a3   : > { %1755 = vmatprep.subr.mxu0 %v1961_v17 }
 0x5a4   : > { %1756 = vmatpush3.msra.mxu0 %v1883_v10 }
 0x5a5   : > { %1757 = vmatprep.subr.mxu0 %v1961_v17 }
 0x5a6   : > { %1758 = vmatpush3.msra.mxu0 %v1885_v11 }
 0x5a7   : > { %1759 = vmatprep.subr.mxu0 %v1961_v17 }
 0x5a8   : > { %1760 = vmatpush3.msra.mxu0 %v1887_v12 }
 0x5a9   : > { %1761 = vmatprep.subr.mxu0 %v1961_v17 }
 0x5aa   : > { %1762 = vmatpush3.msra.mxu0 %v1889_v13 }
 0x5ab   : > { %1763 = vmatprep.subr.mxu0 %v1961_v17 }
 0x5ac   : > { %1764 = vmatpush3.msra.mxu0 %v1891_v14 }
 0x5ad   : > { %1765 = vmatprep.subr.mxu0 %v1961_v17 }
 0x5ae   : > { %1766 = vmatpush3.msra.mxu0 %v1893_v15 }
 0x5af   : > { %1767 = vmatprep.subr.mxu0 %v1961_v17 }
 0x5b0   : > { %1768 = vmatpush3.msra.mxu0 %v1895_v16 }
 0x5b1   : > { %1769 = vmatprep.subr.mxu0 %v1961_v17 }
 0x5b2   : > { %1770 = vmatpush3.msra.mxu0 %v1897_v19 }
 0x5b3   : > { %1772 = vmatmul.mubr.f32.vlgmr.msra.gmra.mxu0 %v1434_v18 }
 0x673   : > { %v1507_v21 = vpop.f32.mrf.mxu0 }
 0x674   : > { %v1508_v22 = vadd.f32 %v1507_v21, %v1439_v20 }
 0x675   : > { %v1773_v23 = vpop.f32.mrf.mxu0 }
 0x676   : > { %1511 = vst [vmem:[%s485_s25] sm:$0xff] %v1508_v22 }
 0x677   : > { %1911 = shalt.err (!%p1908_p3)
}
 0x678   : > { %s1912_s24 = scalar_lea.hbm %s2322_s21, 128  ;;  %s1916_s29 = scalar_lea.hbm %s2390_s30, 256 }
 0x679   : > { %p1913_p4 = scmp.ne.s32.totalorder %s2322_s21, %s1912_s24  ;;  %p1917_p9 = scmp.lt.s32.totalorder %s2322_s21, %s2390_s30 }
 0x67a   : > { %p1918_p10 = scmp.lt.s32.totalorder %s1916_s29, %s1912_s24 }
 0x67b   : > { %p1914_p7 = pnand %p1913_p4, %p2082_p5 }
 0x67c   : > { %p1919_p11 = por %p1918_p10, %p1917_p9 }
 0x67d   : > { %p1915_p8 = pneg %p1914_p7 }
 0x67f   : > { %p1920_p12 = pnand %p1919_p11, %p1915_p8 }
 0x681   : > { %1923 = shalt.err (!%p1920_p12)
}
 0x682   : > { %1774 = dma.vmem_to_hbm [thread:$0]  (%p2082_p5), %s1527_s26, 128, %s2322_s21, %s1513_s16  }
 0x683 PF: > { %s2391_s17 = sld [smem:[#allocation7_spill]] }
 0x684   : > { %s2392_s22 = sld [smem:[#allocation5_spill]] }
 0x689   : > { %p1780_p13 = scmp.ge.s32.totalorder %s2391_s17, 2 }
 0x68a   : > { %s1538_s20 = sand.u32 1, %s2392_s22  }
 0x68b   : > { %p1777_p0 = pnand %p1780_p13, %p2086_p6  ;;  %s1539_s27 = scalar_lea.sflag [#allocation3], %s1538_s20 }
 0x68d   : > { %p1778_p1 = pneg %p1777_p0 }
 0x68f   : > { %1941 = dma.done.wait (%p1778_p1), %s1539_s27, 128  }
 0x690   : > { %1943 = vsyncadd (%p1778_p1), %s1539_s27, 4294967168  ;;  %s2394_s21 = sld [smem:[#allocation8_spill]]  ;;  %s2397_s18 = smov %s1950_s19 }
 0x691   : > { %s2395_s24 = sld [smem:[#allocation6_spill]] }
 0x692   : > { %s2396_s20 = sld [smem:[#allocation9_spill]] }
 0x696   : > { %p25_p2 = scmp.ge.s32.totalorder %s2394_s21, 4  }
 0x697   : > { %s2398_s19 = smov %s2395_s24 }
 0x698   :  { %27 = sbr.rel (!%p25_p2) target bundleno = 5 (0x5), region = 115 }
 0x69d   :  { %1544 = vsyncpa [#allocation3], 1 }
 0x69e   :  { %1546 = vsyncpa [#allocation3 + $0x1], 1 }

</bundles_post_ra>
